<compile_context>
chip_gen: v7x
topology: tpu7x:2x2x1
jax: 0.10.0
libtpu: 0.0.40
codegen_flags: <defaults>
</compile_context>

<pallas_src>
import jax
import jax.numpy as jnp
from jax.experimental import pallas as pl
from jax.experimental.pallas import tpu as pltpu

LANE = 128


def _round_up(n, m):
    return ((n + m - 1) // m) * m


def _sublane(dtype):
    # 32-bit word holds 32 // itemsize packed elements along the sublane axis.
    return 32 // jnp.dtype(dtype).itemsize


def rnn_cell_kernel(xh_ref, w_ref, out_ref):
    """out = tanh([x | h | 1] @ [Wx.T ; Wh.T ; (bx+bh)]) for one N-tile."""
    acc = jnp.dot(xh_ref[...], w_ref[...], preferred_element_type=jnp.float32)
    out_ref[...] = jnp.tanh(acc).astype(out_ref.dtype)


def prepare_rnn_cell_params(wx, bx, wh, bh, *, dtype=jnp.float32):
    """One-time (per model, NOT per step) packing of the PyTorch parameters.

    wx: (H, D_in), wh: (H, H), bx/bh: (H,)   (nn.Linear: y = x @ W.T + b)

    Returns a dict with:
      w : (k_pad, h_pad) = [Wx.T ; Wh.T ; (bx+bh)], contraction length padded
          only to the sublane multiple of `dtype`, output dim zero-padded to a
          lane-dense multiple of 128.
    """
    hidden_dim, input_dim = wx.shape
    assert wh.shape == (hidden_dim, hidden_dim)
    assert bx.shape == (hidden_dim,) and bh.shape == (hidden_dim,)

    sub = _sublane(dtype)
    k_raw = input_dim + hidden_dim + 1          # [x | h | 1 (bias)]
    k_pad = _round_up(k_raw, sub)               # sublane-aligned contraction len
    h_pad = _round_up(hidden_dim, LANE)         # lane-dense output width

    w = jnp.zeros((k_pad, h_pad), dtype)
    w = w.at[:input_dim, :hidden_dim].set(wx.T.astype(dtype))
    w = w.at[input_dim:input_dim + hidden_dim, :hidden_dim].set(wh.T.astype(dtype))
    w = w.at[input_dim + hidden_dim, :hidden_dim].set((bx + bh).astype(dtype))

    return {
        "w": w,
        "input_dim": input_dim, "hidden_dim": hidden_dim,
        "k_pad": k_pad, "h_pad": h_pad,
    }


def _pick_tile_and_vmem(h_pad, k_pad, b_pad, w_itemsize, a_itemsize,
                        weight_tile_budget=32 << 20):
    """Largest 128-multiple N-tile dividing h_pad whose double-buffered
    weight + output tiles fit the budget, plus an explicit VMEM limit."""
    n_blocks = h_pad // LANE
    tn = LANE
    for d in range(n_blocks, 0, -1):
        if n_blocks % d:
            continue
        cand = d * LANE
        need = 2 * k_pad * cand * w_itemsize + 2 * b_pad * cand * a_itemsize
        if need <= weight_tile_budget:
            tn = cand
            break

    vmem_need = (2 * k_pad * tn * w_itemsize        # weight tile, double-buffered
                 + 2 * b_pad * tn * a_itemsize      # output tile, double-buffered
                 + 2 * b_pad * k_pad * a_itemsize)  # grid-invariant [x|h|1] operand
    # Raise the scoped limit when needed (v5e default 16 MiB, v6e 32 MiB);
    # cap below v7x's 64 MiB physical VMEM.
    vmem_limit = max(16 << 20, min(vmem_need + (4 << 20), 60 << 20))
    return tn, vmem_limit


def rnn_cell(x, h, params):
    """One RNNCell step: tanh(Wh(h) + Wx(x)).  x: (B, D_in), h: (B, H)."""
    w = params["w"]
    input_dim = params["input_dim"]
    hidden_dim = params["hidden_dim"]
    k_pad, h_pad = params["k_pad"], params["h_pad"]

    batch = x.shape[0]
    assert x.shape == (batch, input_dim) and h.shape == (batch, hidden_dim)

    a_dtype = x.dtype
    b_pad = _round_up(batch, _sublane(a_dtype))   # sublane-dense batch

    # Build the fused operand [x | h | 1 | 0-pad] once in the wrapper
    # (grid-invariant input; DMA'd into VMEM a single time).
    xh = jnp.zeros((b_pad, k_pad), a_dtype)
    xh = xh.at[:batch, :input_dim].set(x)
    xh = xh.at[:batch, input_dim:input_dim + hidden_dim].set(h.astype(a_dtype))
    xh = xh.at[:batch, input_dim + hidden_dim].set(jnp.asarray(1.0, a_dtype))

    tn, vmem_limit = _pick_tile_and_vmem(
        h_pad, k_pad, b_pad,
        jnp.dtype(w.dtype).itemsize, jnp.dtype(a_dtype).itemsize)
    grid = (h_pad // tn,)

    out_padded = pl.pallas_call(
        rnn_cell_kernel,
        out_shape=jax.ShapeDtypeStruct((b_pad, h_pad), a_dtype),
        grid=grid,
        in_specs=[
            pl.BlockSpec((b_pad, k_pad), lambda j: (0, 0)),   # [x|h|1], grid-invariant
            pl.BlockSpec((k_pad, tn), lambda j: (0, j)),      # fused weight tile
        ],
        out_specs=pl.BlockSpec((b_pad, tn), lambda j: (0, j)),
        compiler_params=pltpu.CompilerParams(
            dimension_semantics=("parallel",),   # N-tiles independent -> v7x 2 TCs
            vmem_limit_bytes=vmem_limit,
        ),
    )(xh, w)
    return out_padded[:batch, :hidden_dim]


if __name__ == "__main__":
    # Small, PyTorch-module-consistent shapes.
    B, D_IN, H = 2, 16, 32
    key = jax.random.PRNGKey(0)
    kx, kh, kwx, kbx, kwh, kbh = jax.random.split(key, 6)

    x = jax.random.normal(kx, (B, D_IN), dtype=jnp.float32)
    h = jax.random.normal(kh, (B, H), dtype=jnp.float32)

    # Deterministic nn.Linear-style init: U(-1/sqrt(fan_in), +1/sqrt(fan_in)).
    bound_x = 1.0 / (D_IN ** 0.5)
    bound_h = 1.0 / (H ** 0.5)
    wx = jax.random.uniform(kwx, (H, D_IN), minval=-bound_x, maxval=bound_x, dtype=jnp.float32)
    bx = jax.random.uniform(kbx, (H,),      minval=-bound_x, maxval=bound_x, dtype=jnp.float32)
    wh = jax.random.uniform(kwh, (H, H),    minval=-bound_h, maxval=bound_h, dtype=jnp.float32)
    bh = jax.random.uniform(kbh, (H,),      minval=-bound_h, maxval=bound_h, dtype=jnp.float32)

    # Pure-JAX reference (same semantics as the PyTorch forward).
    ref = jnp.tanh((h @ wh.T + bh) + (x @ wx.T + bx))

    # --- f32 weights (exactness check) -------------------------------------
    params_f32 = prepare_rnn_cell_params(wx, bx, wh, bh, dtype=jnp.float32)
    out_f32 = jax.block_until_ready(rnn_cell(x, h, params_f32))
    assert out_f32.shape == (B, H)
    assert jnp.allclose(out_f32, ref, atol=1e-5, rtol=1e-5), "f32 mismatch vs reference"

    # --- bf16 weights/activations (v6e/v7x bandwidth path, f32 accumulate) --
    params_bf16 = prepare_rnn_cell_params(wx, bx, wh, bh, dtype=jnp.bfloat16)
    x16 = x.astype(jnp.bfloat16)
    h16 = h.astype(jnp.bfloat16)
    out_bf16 = jax.block_until_ready(rnn_cell(x16, h16, params_bf16))
    assert out_bf16.shape == (B, H)
    # Reference with the same bf16-rounded operands (incl. folded bias), f32 math.
    wx16 = wx.astype(jnp.bfloat16).astype(jnp.float32)
    wh16 = wh.astype(jnp.bfloat16).astype(jnp.float32)
    b16 = (bx + bh).astype(jnp.bfloat16).astype(jnp.float32)
    ref16 = jnp.tanh(h16.astype(jnp.float32) @ wh16.T
                     + x16.astype(jnp.float32) @ wx16.T + b16)
    assert jnp.allclose(out_bf16.astype(jnp.float32), ref16, atol=2e-2, rtol=2e-2), \
        "bf16 mismatch vs reference"

    print("KERNEL_OK")
</pallas_src>

<mosaic_0001>
module attributes {stable_mosaic.version = 11 : i64} {
  func.func @rnn_cell_kernel(%arg0: i32, %arg1: memref<8x56xf32, #tpu.memory_space<vmem>>, %arg2: memref<56x128xf32, #tpu.memory_space<vmem>>, %arg3: memref<8x128xf32, #tpu.memory_space<vmem>>) attributes {dimension_semantics = [#tpu.dimension_semantics<parallel>], iteration_bounds = array<i64: 1>, scalar_prefetch = 0 : i64, scratch_operands = 0 : i64, tpu.core_type = #tpu.core_type<tc>, window_params = [{pipeline_mode = #tpu.pipeline_mode<synchronous>, transform_indices = @transform_0, window_bounds = array<i64: 8, 56>}, {transform_indices = @transform_1, window_bounds = array<i64: 56, 128>}, {transform_indices = @transform_2, window_bounds = array<i64: 8, 128>}]} {
    %c0 = arith.constant 0 : index
    %c0_0 = arith.constant 0 : index
    %0 = vector.load %arg1[%c0, %c0_0] : memref<8x56xf32, #tpu.memory_space<vmem>>, vector<8x56xf32>
    %c0_1 = arith.constant 0 : index
    %c0_2 = arith.constant 0 : index
    %1 = vector.load %arg2[%c0_1, %c0_2] : memref<56x128xf32, #tpu.memory_space<vmem>>, vector<56x128xf32>
    %cst = arith.constant dense<0.000000e+00> : vector<8x128xf32>
    %2 = tpu.matmul %0, %1, %cst {dimension_numbers = #tpu.dot_dimension_numbers<[1], [0], [0], [1], [0, 0, 1, 1], [], []>} : vector<8x56xf32>, vector<56x128xf32>, vector<8x128xf32> -> vector<8x128xf32>
    %3 = math.tanh %2 : vector<8x128xf32>
    %c0_3 = arith.constant 0 : index
    %c0_4 = arith.constant 0 : index
    %4 = vector.load %arg3[%c0_3, %c0_4] : memref<8x128xf32, #tpu.memory_space<vmem>>, vector<8x128xf32>
    tpu.vector_store %arg3[%c0_3, %c0_4], %3 {strides = array<i32>} : memref<8x128xf32, #tpu.memory_space<vmem>>, vector<8x128xf32>,
    return
  }
  func.func @transform_0(%arg0: i32) -> (i32, i32) {
    %c0_i32 = arith.constant 0 : i32
    %c0_i32_0 = arith.constant 0 : i32
    %c0_i32_1 = arith.constant 0 : i32
    return %c0_i32, %c0_i32_0 : i32, i32
  }
  func.func @transform_1(%arg0: i32) -> (i32, i32) {
    %c0_i32 = arith.constant 0 : i32
    %c0_i32_0 = arith.constant 0 : i32
    return %c0_i32, %arg0 : i32, i32
  }
  func.func @transform_2(%arg0: i32) -> (i32, i32) {
    %c0_i32 = arith.constant 0 : i32
    %c0_i32_0 = arith.constant 0 : i32
    return %c0_i32, %arg0 : i32, i32
  }
}

</mosaic_0001>

<bundles_post_ra>
// kernel: tpu_custom_call.1
= control target key start
LH: loop header
LB: loop body
LE: loop exit
PB: predicated region body
PF: predicated region fallthrough
CT: control target
= control target key end

     0   :  { %7 = vsyncpa [#allocation3], 0  ;;  %s321_s0 = inlined_call_operand.hbm [shape: f32[8,56], index: 0, kind: input, shape index: {}]   ;;  %s322_s1 = inlined_call_operand.hbm [shape: f32[56,128], index: 1, kind: input, shape index: {}]   ;;  %s323_s2 = inlined_call_operand.hbm [shape: f32[8,128], index: 2, kind: output, shape index: {}]  }
   0x1   :  { %8 = vsyncpa [#allocation6], 0 }
   0x2   :  { %9 = vsyncpa [#allocation4], 0  ;;  %s255_s9 = smov [#allocation2]   ;;  %s256_s11 = smov [#allocation5]  }
   0x3   :  { %s16_s10 = sshll.u32 %s255_s9, 4  ;;  %s25_s12 = sshll.u32 %s256_s11, 4  ;;  %s17_s10 = int_to_ptr.vmem [resolvable:$true] %s16_s10  ;;  %s278_s12 = int_to_ptr.vmem [resolvable:$true] %s25_s12 }
   0x4   :  { %s183_s15 = scalar_lea.hbm %s321_s0, 128 }
   0x5   :  { %p184_p0 = scmp.ne.s32.totalorder %s321_s0, %s183_s15  ;;  %p187_p1 = scmp.lt.u32.totalorder %s183_s15, %s321_s0 }
   0x7   :  { %p189_p2 = pnand %p187_p1, %p184_p0 }
   0x9   :  { %192 = shalt.err (!%p189_p2)
}
   0xa   :  { %s193_s20 = scalar_lea.vmem %s17_s10, 128  ;;  %p198_p4 = scmp.lt.s32.totalorder %s17_s10, %s17_s10 }
   0xb   :  { %p194_p3 = scmp.ne.s32.totalorder %s17_s10, %s193_s20  ;;  %p199_p5 = scmp.lt.s32.totalorder %s193_s20, %s193_s20 }
   0xd   :  { %p200_p6 = por %p199_p5, %p198_p4 }
   0xf   :  { %p201_p7 = pnand %p200_p6, %p194_p3 }
  0x11   :  { %204 = shalt.err (!%p201_p7)
}
  0x12   :  { %19 = dma.hbm_to_vmem [thread:$0]  %s321_s0, 128, %s17_s10, [#allocation3]  }
  0x13   :  { %s205_s25 = scalar_lea.hbm %s322_s1, 896 }
  0x14   :  { %p206_p8 = scmp.ne.s32.totalorder %s322_s1, %s205_s25  ;;  %p209_p9 = scmp.lt.u32.totalorder %s205_s25, %s322_s1 }
  0x16   :  { %p211_p10 = pnand %p209_p9, %p206_p8 }
  0x18   :  { %214 = shalt.err (!%p211_p10)
}
  0x19   :  { %s215_s30 = scalar_lea.vmem %s278_s12, 896  ;;  %p220_p12 = scmp.lt.s32.totalorder %s278_s12, %s278_s12 }
  0x1a   :  { %p216_p11 = scmp.ne.s32.totalorder %s278_s12, %s215_s30  ;;  %p221_p13 = scmp.lt.s32.totalorder %s215_s30, %s215_s30 }
  0x1c   :  { %p222_p0 = por %p221_p13, %p220_p12 }
  0x1e   :  { %p223_p1 = pnand %p222_p0, %p216_p11 }
  0x20   :  { %226 = shalt.err (!%p223_p1)
}
  0x21   :  { %s257_s0 = smov 128   ;;  %s258_s3 = smov 8  }
  0x22   :  { %31 = dma.hbm_to_vmem [thread:$0]  %s322_s1, 896, %s278_s12, [#allocation6], %s257_s0, %s257_s0, %s258_s3  }
  0x23   :  { %249 = dma.done.wait [#allocation3], 128  }
  0x24   :  { %250 = vsyncadd [#allocation3], 4294967168 }
  0x25   :  { %251 = dma.done.wait [#allocation6], 896  }
  0x26   :  { %252 = vsyncadd [#allocation6], 4294966400  ;;  %v259_v0 = vmov 0.0|0.0   ;;  %vm260_vm0 = vmmov 0   ;;  %v261_v1 = vmov 0.0   ;;  %v39_v2 = vld [vmem:[#allocation5] sm:$0xff] }
  0x27   :  { %164 = vmatprep.subr.bf16.mxu0 %v259_v0  ;;  %161 = vmatprep.mubr.msk.f32.mxu0 %vm260_vm0, %v261_v1  ;;  %v40_v3 = vld [vmem:[#allocation5 + $0x8] sm:$0xff]  ;;  %v41_v4 = vld [vmem:[#allocation5 + $0x10] sm:$0xff]  ;;  %v42_v6 = vld [vmem:[#allocation5 + $0x18] sm:$0xff]  ;;  %vm46_vm1 = vcmask 457728   ;;  %s262_s1 = smov [#allocation7]  }
  0x28   :  { %v165_v5 = vpack.c.bf16 %v40_v3, %v39_v2  ;;  %v168_v7 = vpack.c.bf16 %v42_v6, %v41_v4  ;;  %v43_v8 = vld [vmem:[#allocation5 + $0x20] sm:$0xff]  ;;  %v44_v9 = vld [vmem:[#allocation5 + $0x28] sm:$0xff]  ;;  %v45_v11 = vld [vmem:[#allocation5 + $0x30] sm:$0xff]  ;;  %s128_s6 = sshll.u32 %s262_s1, 4  ;;  %s129_s6 = int_to_ptr.vmem [resolvable:$true] %s128_s6 }
  0x29   :  { %v171_v10 = vpack.c.bf16 %v44_v9, %v43_v8  ;;  %v38_v12 = vld [vmem:[#allocation2] sm:$0xff]  ;;  %s227_s7 = scalar_lea.vmem %s129_s6, 128  ;;  %p232_p3 = scmp.lt.s32.totalorder %s129_s6, %s129_s6 }
  0x2a   :  { %166 = vmatpush3.bf16.msra.mxu0 %v165_v5  ;;  %p228_p2 = scmp.ne.s32.totalorder %s129_s6, %s227_s7  ;;  %p233_p4 = scmp.lt.s32.totalorder %s227_s7, %s227_s7 }
  0x2b   :  { %167 = vmatprep.subr.bf16.mxu0 %v259_v0 }
  0x2c   :  { %p234_p5 = por %p233_p4, %p232_p3 }
  0x2e   :  { %169 = vmatpush3.bf16.msra.mxu0 %v168_v7  ;;  %p235_p6 = pnand %p234_p5, %p228_p2 }
  0x2f   :  { %170 = vmatprep.subr.bf16.mxu0 %v259_v0 }
  0x32   :  { %172 = vmatpush3.bf16.msra.mxu0 %v171_v10 }
  0x33   :  { %159 = vmatprep.subr.mxu0 %v261_v1 }
  0x36   :  { %160 = vmatpush3.msra.mxu0 %v45_v11 }
  0x37   :  { %162 = vmatmul.mubr.msk.f32.vlgmr.msra.gmra.mrb[0].mxu0 %vm46_vm1, %v38_v12 }
 0x10a   :  { %v116_v13 = vpop.f32.mrb[0].mxu0 }
 0x10b   :  { %181 = vtanh.f32 %v116_v13  ;;  %v163_v14 = vpop.f32.mrb[1].mxu0 }
 0x115   :  { %v182_v15 = vpop.eup %181 }
 0x116   :  { %121 = vst [vmem:[#allocation7] sm:$0xff] %v182_v15 }
 0x117   :  { %238 = shalt.err (!%p235_p6)
}
 0x118   :  { %s239_s10 = scalar_lea.hbm %s323_s2, 128 }
 0x119   :  { %p240_p7 = scmp.ne.s32.totalorder %s323_s2, %s239_s10  ;;  %p243_p8 = scmp.lt.u32.totalorder %s239_s10, %s323_s2 }
 0x11b   :  { %p245_p9 = pnand %p243_p8, %p240_p7 }
 0x11d   :  { %248 = shalt.err (!%p245_p9)
}
 0x11e   :  { %131 = dma.vmem_to_hbm [thread:$0]  %s129_s6, 128, %s323_s2, [#allocation4]  }
 0x11f   :  { %253 = dma.done.wait [#allocation4], 128  }
 0x120   :  { %254 = vsyncadd [#allocation4], 4294967168 }
 0x121   :  { %135 = vsyncpa [#allocation3], 1 }
 0x122   :  { %136 = vsyncpa [#allocation6], 1 }
 0x123   :  { %137 = vsyncpa [#allocation4], 1 }

</bundles_post_ra>
